<compile_context>
chip_gen: v7x
topology: tpu7x:2x2x1
jax: 0.10.0
libtpu: 0.0.40
codegen_flags: <defaults>
</compile_context>

<pallas_src>
import math

import jax
import jax.numpy as jnp
from jax.experimental import pallas as pl
from jax.experimental.pallas import tpu as pltpu


# ---------------------------------------------------------------------------
# Kernel: one VPU broadcast multiply per (tile_r, tile_c) block.
# ---------------------------------------------------------------------------
def _mask_mul_kernel(x_ref, m_ref, o_ref):
    # x_ref: (tile_r, tile_c); m_ref: (1, tile_c) broadcast over rows.
    o_ref[...] = x_ref[...] * m_ref[...]


# ---------------------------------------------------------------------------
# Sizing helpers (all padding-aware).
# ---------------------------------------------------------------------------
_DEFAULT_BLOCK_BYTES = 4 * 1024 * 1024    # near the HBM-roofline plateau
_DEFAULT_VMEM_LIMIT = 40 * 1024 * 1024    # safe inside v7x's 64 MiB physical VMEM
_BIG_BLOCK_BYTES = 8 * 1024 * 1024        # v5e / v6e (128 MiB VMEM)
_BIG_VMEM_LIMIT = 80 * 1024 * 1024
_MAX_LANE_DENSE_ROW_BYTES = 256 * 1024    # cap on the packed row length L


def _round_up(x, m):
    return ((x + m - 1) // m) * m


def _device_budgets():
    """(target_block_bytes, vmem_limit_bytes); conservative defaults if the
    hardware query is unavailable."""
    block_bytes, vmem_limit = _DEFAULT_BLOCK_BYTES, _DEFAULT_VMEM_LIMIT
    try:
        vmem_cap = int(pltpu.get_tpu_info().vmem_capacity_bytes)
        if vmem_cap >= 96 * 1024 * 1024:   # v5e / v6e: 128 MiB VMEM
            block_bytes, vmem_limit = _BIG_BLOCK_BYTES, _BIG_VMEM_LIMIT
    except Exception:
        pass
    return block_bytes, vmem_limit


def _choose_col_tile(C, col_budget_bytes, itemsize):
    """Full C if its 128-lane-padded footprint fits the budget, else a
    128-multiple tile (ragged final column block is legal)."""
    if _round_up(C, 128) * itemsize <= col_budget_bytes:
        return C
    tile_c = max(128, ((col_budget_bytes // itemsize) // 128) * 128)
    return min(tile_c, C)


def _choose_row_tile(R, rows_budget, *, want_steps=1, align=8):
    """Row tile: either the full dim R, or a multiple of `align` (legal block),
    at most `rows_budget`, forcing >= `want_steps` grid steps when R allows it
    and preferring a tile that divides R evenly (no ragged final block)."""
    cap = min(R, max(align, (rows_budget // align) * align))
    if want_steps > 1 and R > align * want_steps:
        cap = min(cap, max(align, ((R // want_steps) // align) * align))
    if cap >= R:
        return R
    tile = max(align, (cap // align) * align)
    # Bounded search downward for a tile that divides R evenly.
    for cand in range(tile, max(align, tile - 16 * align) - 1, -align):
        if R % cand == 0:
            return cand
    return tile


def _padded_block_bytes(rows, cols, itemsize, sublane):
    return _round_up(rows, sublane) * _round_up(cols, 128) * itemsize


# ---------------------------------------------------------------------------
# Wrapper
# ---------------------------------------------------------------------------
def masking_forward(x, mask, *, target_block_bytes=None, vmem_limit_bytes=None,
                    donate_x=False):
    """x: (B, H, k, k); mask: (1, 1, k, k) learnable parameter -> x * mask."""
    B, H, k, k2 = x.shape
    assert k == k2, "expected square trailing dims"
    dtype = x.dtype
    itemsize = int(jnp.dtype(dtype).itemsize)
    sublane = max(8, 32 // itemsize)            # f32: 8, bf16: 16, int8/fp8: 32
    slab = k * k
    total = B * H * slab
    mask_flat = mask.reshape(slab).astype(dtype)

    auto_block, auto_limit = _device_budgets()
    if target_block_bytes is None:
        target_block_bytes = auto_block
    if vmem_limit_bytes is None:
        vmem_limit_bytes = auto_limit

    # ---- Choose a 2D (rows, lanes) layout ---------------------------------
    # Lane-dense packing: rows of L = lcm(k*k, 128) so every lane is used and
    # no slab straddles a row boundary (mask stays one replicated row).
    L = slab * (128 // math.gcd(slab, 128))     # lcm(k*k, 128)
    if total >= L and total % L == 0 and L * itemsize <= _MAX_LANE_DENSE_ROW_BYTES:
        R, C = total // L, L
        x2d = x.reshape(R, C)                                # contiguous reshape
        mask_row = jnp.tile(mask_flat, L // slab).reshape(1, C)
    else:
        # General path: one (k*k)-element slab per row; pads only k*k -> 128n.
        R, C = B * H, slab
        x2d = x.reshape(R, C)
        mask_row = mask_flat.reshape(1, C)

    # ---- Padding-aware block sizing ---------------------------------------
    col_budget = max(128 * itemsize, target_block_bytes // sublane)
    tile_c = _choose_col_tile(C, col_budget, itemsize)
    padded_c_bytes = _round_up(tile_c, 128) * itemsize
    grid_c = pl.cdiv(C, tile_c)

    rows_budget = max(1, target_block_bytes // padded_c_bytes)
    # Keep >= 2 total grid steps so v7x's two TensorCores both get work and the
    # DMA-in / multiply / DMA-out stages actually overlap.
    want_steps = 1 if grid_c >= 2 else 2
    tile_r = _choose_row_tile(R, rows_budget, want_steps=want_steps, align=sublane)

    # Safety: 2x input + 2x output double buffers + sublane-padded mask buffers
    # must fit under the VMEM limit with headroom for Mosaic internal scratch.
    def _planned_vmem(tr):
        blk = _padded_block_bytes(tr, tile_c, itemsize, sublane)
        msk = _padded_block_bytes(1, tile_c, itemsize, sublane)
        return 4 * blk + 2 * msk

    vmem_budget = vmem_limit_bytes - 8 * 1024 * 1024
    while _planned_vmem(tile_r) > vmem_budget and tile_r > sublane:
        tile_r = max(sublane, ((tile_r // 2) // sublane) * sublane)

    grid_r = pl.cdiv(R, tile_r)

    compiler_params = pltpu.CompilerParams(
        dimension_semantics=("parallel", "parallel"),
        vmem_limit_bytes=vmem_limit_bytes,
    )
    cost = pl.CostEstimate(
        flops=total,
        transcendentals=0,
        bytes_accessed=2 * total * itemsize + C * itemsize,
    )
    extra = {"input_output_aliases": {0: 0}} if donate_x else {}

    out2d = pl.pallas_call(
        _mask_mul_kernel,
        out_shape=jax.ShapeDtypeStruct((R, C), dtype),
        grid_spec=pltpu.PrefetchScalarGridSpec(
            num_scalar_prefetch=0,
            grid=(grid_r, grid_c),
            in_specs=[
                pl.BlockSpec((tile_r, tile_c), lambda i, j: (i, j)),
                pl.BlockSpec((1, tile_c), lambda i, j: (0, j)),  # row-constant mask
            ],
            out_specs=pl.BlockSpec((tile_r, tile_c), lambda i, j: (i, j)),
        ),
        compiler_params=compiler_params,
        cost_estimate=cost,
        **extra,
    )(x2d, mask_row)
    return out2d.reshape(B, H, k, k)


def make_mask(k, dtype=jnp.float32):
    # nn.Parameter(torch.tril(torch.ones(k, k)).view(1, 1, k, k)) at init time.
    return jnp.tril(jnp.ones((k, k), dtype=dtype)).reshape(1, 1, k, k)


# ---------------------------------------------------------------------------
# Demo / self-check
# ---------------------------------------------------------------------------
if __name__ == "__main__":
    key = jax.random.PRNGKey(0)

    # 1) Lane-dense packing path (k*k packs evenly into 128-lane rows).
    B, H, k = 2, 4, 8
    x = jax.random.normal(key, (B, H, k, k), dtype=jnp.float32)
    mask = make_mask(k, dtype=x.dtype)
    out = jax.block_until_ready(masking_forward(x, mask))
    assert out.shape == x.shape
    assert jnp.allclose(out, x * mask), "Pallas masking mismatch (lane-dense path)"

    # 2) General path (k*k = 100 does not pack into 128-lane rows).
    B2, H2, k2 = 2, 3, 10
    x2 = jax.random.normal(jax.random.PRNGKey(1), (B2, H2, k2, k2), dtype=jnp.float32)
    mask2 = make_mask(k2, dtype=x2.dtype)
    out2 = jax.block_until_ready(masking_forward(x2, mask2))
    assert jnp.allclose(out2, x2 * mask2), "Pallas masking mismatch (general path)"

    # 3) Multi-grid-step path (>= 2 row blocks) with a trained (non-tril) mask:
    #    the kernel must use the passed parameter, not regenerate tril.
    B3, H3, k3 = 4, 8, 32
    x3 = jax.random.normal(jax.random.PRNGKey(2), (B3, H3, k3, k3), dtype=jnp.float32)
    mask3 = make_mask(k3, dtype=x3.dtype) + 0.25
    out3 = jax.block_until_ready(masking_forward(x3, mask3))
    assert jnp.allclose(out3, x3 * mask3), "Pallas masking mismatch (multi-step path)"

    print("KERNEL_OK")
</pallas_src>

<mosaic_0001>
module attributes {stable_mosaic.version = 11 : i64} {
  func.func @_mask_mul_kernel(%arg0: i32, %arg1: i32, %arg2: memref<4x128xf32, #tpu.memory_space<vmem>>, %arg3: memref<1x128xf32, #tpu.memory_space<vmem>>, %arg4: memref<4x128xf32, #tpu.memory_space<vmem>>) attributes {dimension_semantics = [#tpu.dimension_semantics<parallel>, #tpu.dimension_semantics<parallel>], iteration_bounds = array<i64: 1, 1>, scalar_prefetch = 0 : i64, scratch_operands = 0 : i64, tpu.core_type = #tpu.core_type<tc>, window_params = [{transform_indices = @transform_0, window_bounds = array<i64: 4, 128>}, {transform_indices = @transform_1, window_bounds = array<i64: 1, 128>}, {transform_indices = @transform_2, window_bounds = array<i64: 4, 128>}]} {
    %c0 = arith.constant 0 : index
    %c0_0 = arith.constant 0 : index
    %0 = vector.load %arg2[%c0, %c0_0] : memref<4x128xf32, #tpu.memory_space<vmem>>, vector<4x128xf32>
    %c0_1 = arith.constant 0 : index
    %c0_2 = arith.constant 0 : index
    %1 = vector.load %arg3[%c0_1, %c0_2] : memref<1x128xf32, #tpu.memory_space<vmem>>, vector<1x128xf32>
    %2 = vector.broadcast %1 : vector<1x128xf32> to vector<4x128xf32>
    %3 = arith.mulf %0, %2 : vector<4x128xf32>
    %c0_3 = arith.constant 0 : index
    %c0_4 = arith.constant 0 : index
    %4 = vector.load %arg4[%c0_3, %c0_4] : memref<4x128xf32, #tpu.memory_space<vmem>>, vector<4x128xf32>
    tpu.vector_store %arg4[%c0_3, %c0_4], %3 {strides = array<i32>} : memref<4x128xf32, #tpu.memory_space<vmem>>, vector<4x128xf32>,
    return
  }
  func.func @transform_0(%arg0: i32, %arg1: i32) -> (i32, i32) {
    %c0_i32 = arith.constant 0 : i32
    return %arg0, %arg1 : i32, i32
  }
  func.func @transform_1(%arg0: i32, %arg1: i32) -> (i32, i32) {
    %c0_i32 = arith.constant 0 : i32
    %c0_i32_0 = arith.constant 0 : i32
    return %c0_i32, %arg1 : i32, i32
  }
  func.func @transform_2(%arg0: i32, %arg1: i32) -> (i32, i32) {
    %c0_i32 = arith.constant 0 : i32
    return %arg0, %arg1 : i32, i32
  }
}

</mosaic_0001>

<bundles_post_ra>
// kernel: tpu_custom_call.1
= control target key start
LH: loop header
LB: loop body
LE: loop exit
PB: predicated region body
PF: predicated region fallthrough
CT: control target
= control target key end

     0   :  { %7 = vsyncpa [#allocation3], 0  ;;  %s144_s0 = inlined_call_operand.hbm [shape: f32[4,128], index: 0, kind: input, shape index: {}]   ;;  %s145_s1 = inlined_call_operand.vmem [shape: f32[1,128], index: 1, kind: input, shape index: {}]   ;;  %s146_s2 = inlined_call_operand.hbm [shape: f32[4,128], index: 2, kind: output, shape index: {}]  }
   0x1   :  { %8 = vsyncpa [#allocation4], 0  ;;  %s100_s9 = smov [#allocation2]   ;;  %s52_s13 = scalar_lea.hbm %s144_s0, 64 }
   0x2   :  { %s15_s10 = sshll.u32 %s100_s9, 4  ;;  %p53_p0 = scmp.ne.s32.totalorder %s144_s0, %s52_s13  ;;  %s16_s10 = int_to_ptr.vmem [resolvable:$true] %s15_s10 }
   0x3   :  { %p56_p1 = scmp.lt.u32.totalorder %s52_s13, %s144_s0 }
   0x5   :  { %p58_p2 = pnand %p56_p1, %p53_p0 }
   0x7   :  { %61 = shalt.err (!%p58_p2)
}
   0x8   :  { %s62_s18 = scalar_lea.vmem %s16_s10, 64  ;;  %p67_p4 = scmp.lt.s32.totalorder %s16_s10, %s16_s10 }
   0x9   :  { %p63_p3 = scmp.ne.s32.totalorder %s16_s10, %s62_s18  ;;  %p68_p5 = scmp.lt.s32.totalorder %s62_s18, %s62_s18 }
   0xb   :  { %p69_p6 = por %p68_p5, %p67_p4 }
   0xd   :  { %p70_p7 = pnand %p69_p6, %p63_p3 }
   0xf   :  { %73 = shalt.err (!%p70_p7)
}
  0x10   :  { %18 = dma.hbm_to_vmem [thread:$0]  %s144_s0, 64, %s16_s10, [#allocation3]  }
  0x11   :  { %96 = dma.done.wait [#allocation3], 64  }
  0x12   :  { %97 = vsyncadd [#allocation3], 4294967232  ;;  %s101_s21 = smov [#allocation5]   ;;  %v24_v0 = vld [vmem:[#allocation2] sm:$0xf] }
  0x13   :  { %s40_s22 = sshll.u32 %s101_s21, 4  ;;  %v49_v1 = vld [vmem:[%s145_s1] ss:$0 sm:$0xff]  ;;  %s41_s22 = int_to_ptr.vmem [resolvable:$true] %s40_s22 }
  0x14   :  { %v32_v2 = vmul.f32 %v49_v1, %v24_v0  ;;  %s74_s25 = scalar_lea.vmem %s41_s22, 64  ;;  %p79_p9 = scmp.lt.s32.totalorder %s41_s22, %s41_s22 }
  0x15   :  { %p75_p8 = scmp.ne.s32.totalorder %s41_s22, %s74_s25  ;;  %p80_p10 = scmp.lt.s32.totalorder %s74_s25, %s74_s25 }
  0x16   :  { %33 = vst [vmem:[#allocation5] sm:$0xf] %v32_v2 }
  0x17   :  { %p81_p11 = por %p80_p10, %p79_p9 }
  0x19   :  { %p82_p12 = pnand %p81_p11, %p75_p8 }
  0x1b   :  { %85 = shalt.err (!%p82_p12)
}
  0x1c   :  { %s86_s27 = scalar_lea.hbm %s146_s2, 64 }
  0x1d   :  { %p87_p13 = scmp.ne.s32.totalorder %s146_s2, %s86_s27  ;;  %p90_p0 = scmp.lt.u32.totalorder %s86_s27, %s146_s2 }
  0x1f   :  { %p92_p1 = pnand %p90_p0, %p87_p13 }
  0x21   :  { %95 = shalt.err (!%p92_p1)
}
  0x22   :  { %43 = dma.vmem_to_hbm [thread:$0]  %s41_s22, 64, %s146_s2, [#allocation4]  }
  0x23   :  { %98 = dma.done.wait [#allocation4], 64  }
  0x24   :  { %99 = vsyncadd [#allocation4], 4294967232 }
  0x25   :  { %47 = vsyncpa [#allocation3], 1 }
  0x26   :  { %48 = vsyncpa [#allocation4], 1 }

</bundles_post_ra>
